<compile_context>
chip_gen: v7x
topology: tpu7x:2x2x1
jax: 0.10.0
libtpu: 0.0.40
codegen_flags: <defaults>
</compile_context>

<pallas_src>
import functools

import jax
import jax.numpy as jnp
from jax.experimental import pallas as pl
from jax.experimental.pallas import tpu as pltpu

LANE = 128      # lane width: last dim of matmul operands / output
SUBLANE = 8     # f32 sublane granularity: second-to-last dim


def _round_up(n, m):
    return ((n + m - 1) // m) * m


def q_mlp_kernel(x_ref, w1_ref, b1_ref, w2_ref, b2_ref, w3_ref, b3_ref, o_ref):
    """Fused 3-layer MLP forward on a single VMEM-resident, lane-aligned tile.

    Matmuls take bf16 operands (MXU), accumulate in f32; bias-add and ReLU
    run in f32 on the VPU.
    """
    x = x_ref[...]                                                         # (B, S_p) bf16
    h1 = jnp.dot(x, w1_ref[...], preferred_element_type=jnp.float32)      # (B, H_p) f32
    h1 = jnp.maximum(h1 + b1_ref[...], 0.0)                               # ReLU, f32 VPU
    h2 = jnp.dot(h1.astype(jnp.bfloat16), w2_ref[...],
                 preferred_element_type=jnp.float32)                      # (B, H_p)
    h2 = jnp.maximum(h2 + b2_ref[...], 0.0)
    out = jnp.dot(h2.astype(jnp.bfloat16), w3_ref[...],
                  preferred_element_type=jnp.float32)                     # (B, A_p)
    o_ref[...] = (out + b3_ref[...]).astype(o_ref.dtype)                  # lane-dense store


@functools.partial(jax.jit, static_argnames=("action_dim",))
def q_forward(x, w1, b1, w2, b2, w3, b3, *, action_dim):
    """Per-step forward. Expects params already padded/cast by prepare_params."""
    batch, state_dim = x.shape
    state_pad = w1.shape[0]
    action_pad = w3.shape[1]

    # Pad x's feature dim to the padded contraction dim and cast to bf16.
    xp = jnp.pad(x, ((0, 0), (0, state_pad - state_dim))).astype(jnp.bfloat16)

    # Tiny problem: whole-array VMEM blocks, no grid (grid-step overhead
    # would dominate at batch=8). Whole-array blocks also sidestep the
    # (8,128) block divisibility constraint.
    vmem = pl.BlockSpec(memory_space=pltpu.MemorySpace.VMEM)

    out_padded = pl.pallas_call(
        q_mlp_kernel,
        out_shape=jax.ShapeDtypeStruct((batch, action_pad), jnp.float32),
        in_specs=[vmem] * 7,
        out_specs=vmem,
    )(xp, w1, b1, w2, b2, w3, b3)

    # Free slice back to the real action dim (padded columns are exactly 0).
    return out_padded[:, :action_dim]


def prepare_params(w1, b1, w2, b2, w3, b3):
    """One-time pad/cast of (in, out)-layout params to TPU-aligned shapes.

    Zero-padding the extra hidden/action columns (weights AND biases) keeps
    the forward pass exact because ReLU(0) = 0 and padded output columns are
    discarded. Weights are cast to bf16 for the MXU; biases stay f32.
    Hoisted out of the per-step RL loop: call once, reuse every step.
    """
    state_dim, hidden_dim = w1.shape
    action_dim = w3.shape[1]
    s_p = _round_up(state_dim, SUBLANE)
    h_p = _round_up(hidden_dim, LANE)
    a_p = _round_up(action_dim, LANE)

    def pad2(m, rows, cols):
        return jnp.pad(m, ((0, rows - m.shape[0]), (0, cols - m.shape[1])))

    w1p = pad2(w1, s_p, h_p).astype(jnp.bfloat16)
    w2p = pad2(w2, h_p, h_p).astype(jnp.bfloat16)
    w3p = pad2(w3, h_p, a_p).astype(jnp.bfloat16)
    b1p = pad2(b1, 1, h_p).astype(jnp.float32)
    b2p = pad2(b2, 1, h_p).astype(jnp.float32)
    b3p = pad2(b3, 1, a_p).astype(jnp.float32)
    return w1p, b1p, w2p, b2p, w3p, b3p


def init_params(key, state_dim, hidden_dim, action_dim):
    """PyTorch nn.Linear-style init (uniform +/- 1/sqrt(fan_in)), (in, out) layout."""
    ks = jax.random.split(key, 6)

    def linear(kw, kb, fan_in, fan_out):
        bound = 1.0 / jnp.sqrt(float(fan_in))
        w = jax.random.uniform(kw, (fan_in, fan_out), jnp.float32, -bound, bound)
        b = jax.random.uniform(kb, (1, fan_out), jnp.float32, -bound, bound)
        return w, b

    w1, b1 = linear(ks[0], ks[1], state_dim, hidden_dim)
    w2, b2 = linear(ks[2], ks[3], hidden_dim, hidden_dim)
    w3, b3 = linear(ks[4], ks[5], hidden_dim, action_dim)
    return w1, b1, w2, b2, w3, b3


if __name__ == "__main__":
    # Shapes consistent with a Q-network: batch=8 states of dim 4,
    # hidden_dim=50 (module default), 2 discrete actions.
    batch, state_dim, hidden_dim, action_dim = 8, 4, 50, 2

    key = jax.random.PRNGKey(0)
    k_x, k_p = jax.random.split(key)

    x = jax.random.normal(k_x, (batch, state_dim), jnp.float32)
    raw_params = init_params(k_p, state_dim, hidden_dim, action_dim)

    # One-time pad + bf16 cast, hoisted out of the per-step path.
    padded_params = prepare_params(*raw_params)

    out = q_forward(x, *padded_params, action_dim=action_dim)
    jax.block_until_ready(out)
    assert out.shape == (batch, action_dim)

    # Semantic check vs. the f32 PyTorch-equivalent math (loose tol: the
    # kernel uses bf16 matmul operands with f32 accumulation).
    w1, b1, w2, b2, w3, b3 = raw_params
    ref_f32 = jnp.maximum(x @ w1 + b1, 0.0)
    ref_f32 = jnp.maximum(ref_f32 @ w2 + b2, 0.0)
    ref_f32 = ref_f32 @ w3 + b3
    assert jnp.allclose(out, ref_f32, atol=5e-2, rtol=5e-2)

    # Tight check vs. a plain-JAX reference using the same bf16/f32 mix.
    w1p, b1p, w2p, b2p, w3p, b3p = padded_params
    xp = jnp.pad(x, ((0, 0), (0, w1p.shape[0] - state_dim))).astype(jnp.bfloat16)
    r = jnp.maximum(jnp.dot(xp, w1p, preferred_element_type=jnp.float32) + b1p, 0.0)
    r = jnp.maximum(jnp.dot(r.astype(jnp.bfloat16), w2p,
                            preferred_element_type=jnp.float32) + b2p, 0.0)
    r = jnp.dot(r.astype(jnp.bfloat16), w3p,
                preferred_element_type=jnp.float32) + b3p
    assert jnp.allclose(out, r[:, :action_dim], atol=1e-4, rtol=1e-4)

    print("KERNEL_OK")
</pallas_src>

<mosaic_0001>
module attributes {stable_mosaic.version = 11 : i64} {
  func.func @q_mlp_kernel(%arg0: memref<8x8xbf16, #tpu.memory_space<vmem>>, %arg1: memref<8x128xbf16, #tpu.memory_space<vmem>>, %arg2: memref<1x128xf32, #tpu.memory_space<vmem>>, %arg3: memref<128x128xbf16, #tpu.memory_space<vmem>>, %arg4: memref<1x128xf32, #tpu.memory_space<vmem>>, %arg5: memref<128x128xbf16, #tpu.memory_space<vmem>>, %arg6: memref<1x128xf32, #tpu.memory_space<vmem>>, %arg7: memref<8x128xf32, #tpu.memory_space<vmem>>) attributes {dimension_semantics = [], scalar_prefetch = 0 : i64, scratch_operands = 0 : i64, tpu.core_type = #tpu.core_type<tc>} {
    %c0 = arith.constant 0 : index
    %c0_0 = arith.constant 0 : index
    %0 = vector.load %arg0[%c0, %c0_0] : memref<8x8xbf16, #tpu.memory_space<vmem>>, vector<8x8xbf16>
    %c0_1 = arith.constant 0 : index
    %c0_2 = arith.constant 0 : index
    %1 = vector.load %arg1[%c0_1, %c0_2] : memref<8x128xbf16, #tpu.memory_space<vmem>>, vector<8x128xbf16>
    %cst = arith.constant dense<0.000000e+00> : vector<8x128xf32>
    %2 = tpu.matmul %0, %1, %cst {dimension_numbers = #tpu.dot_dimension_numbers<[1], [0], [0], [1], [0, 0, 1, 1], [], []>} : vector<8x8xbf16>, vector<8x128xbf16>, vector<8x128xf32> -> vector<8x128xf32>
    %c0_3 = arith.constant 0 : index
    %c0_4 = arith.constant 0 : index
    %3 = vector.load %arg2[%c0_3, %c0_4] : memref<1x128xf32, #tpu.memory_space<vmem>>, vector<1x128xf32>
    %4 = vector.broadcast %3 : vector<1x128xf32> to vector<8x128xf32>
    %5 = arith.addf %2, %4 : vector<8x128xf32>
    %cst_5 = arith.constant 0.000000e+00 : f32
    %6 = vector.broadcast %cst_5 : f32 to vector<8x128xf32>
    %7 = arith.maximumf %5, %6 : vector<8x128xf32>
    %8 = arith.truncf %7 : vector<8x128xf32> to vector<8x128xbf16>
    %c0_6 = arith.constant 0 : index
    %c0_7 = arith.constant 0 : index
    %9 = vector.load %arg3[%c0_6, %c0_7] : memref<128x128xbf16, #tpu.memory_space<vmem>>, vector<128x128xbf16>
    %cst_8 = arith.constant dense<0.000000e+00> : vector<8x128xf32>
    %10 = tpu.matmul %8, %9, %cst_8 {dimension_numbers = #tpu.dot_dimension_numbers<[1], [0], [0], [1], [0, 0, 1, 1], [], []>} : vector<8x128xbf16>, vector<128x128xbf16>, vector<8x128xf32> -> vector<8x128xf32>
    %c0_9 = arith.constant 0 : index
    %c0_10 = arith.constant 0 : index
    %11 = vector.load %arg4[%c0_9, %c0_10] : memref<1x128xf32, #tpu.memory_space<vmem>>, vector<1x128xf32>
    %12 = vector.broadcast %11 : vector<1x128xf32> to vector<8x128xf32>
    %13 = arith.addf %10, %12 : vector<8x128xf32>
    %cst_11 = arith.constant 0.000000e+00 : f32
    %14 = vector.broadcast %cst_11 : f32 to vector<8x128xf32>
    %15 = arith.maximumf %13, %14 : vector<8x128xf32>
    %16 = arith.truncf %15 : vector<8x128xf32> to vector<8x128xbf16>
    %c0_12 = arith.constant 0 : index
    %c0_13 = arith.constant 0 : index
    %17 = vector.load %arg5[%c0_12, %c0_13] : memref<128x128xbf16, #tpu.memory_space<vmem>>, vector<128x128xbf16>
    %cst_14 = arith.constant dense<0.000000e+00> : vector<8x128xf32>
    %18 = tpu.matmul %16, %17, %cst_14 {dimension_numbers = #tpu.dot_dimension_numbers<[1], [0], [0], [1], [0, 0, 1, 1], [], []>} : vector<8x128xbf16>, vector<128x128xbf16>, vector<8x128xf32> -> vector<8x128xf32>
    %c0_15 = arith.constant 0 : index
    %c0_16 = arith.constant 0 : index
    %19 = vector.load %arg6[%c0_15, %c0_16] : memref<1x128xf32, #tpu.memory_space<vmem>>, vector<1x128xf32>
    %20 = vector.broadcast %19 : vector<1x128xf32> to vector<8x128xf32>
    %21 = arith.addf %18, %20 : vector<8x128xf32>
    %c0_17 = arith.constant 0 : index
    %c0_18 = arith.constant 0 : index
    %22 = vector.load %arg7[%c0_17, %c0_18] : memref<8x128xf32, #tpu.memory_space<vmem>>, vector<8x128xf32>
    tpu.vector_store %arg7[%c0_17, %c0_18], %21 {strides = array<i32>} : memref<8x128xf32, #tpu.memory_space<vmem>>, vector<8x128xf32>,
    return
  }
}

</mosaic_0001>

<bundles_post_ra>
// kernel: q_forward.1
= control target key start
LH: loop header
LB: loop body
LE: loop exit
PB: predicated region body
PF: predicated region fallthrough
CT: control target
= control target key end

     0   :  { %12 = vsyncpa [#allocation3], 0  ;;  %s612_s0 = inlined_call_operand.vmem [shape: bf16[8,8], index: 0, kind: input, shape index: {}]   ;;  %s613_s1 = inlined_call_operand.vmem [shape: bf16[8,128], index: 1, kind: input, shape index: {}]   ;;  %s614_s2 = inlined_call_operand.vmem [shape: f32[1,128], index: 2, kind: input, shape index: {}]   ;;  %s615_s3 = inlined_call_operand.hbm [shape: bf16[128,128], index: 3, kind: input, shape index: {}]   ;;  %s616_s4 = inlined_call_operand.vmem [shape: f32[1,128], index: 4, kind: input, shape index: {}]   ;;  %s617_s5 = inlined_call_operand.hbm [shape: bf16[128,128], index: 5, kind: input, shape index: {}]   ;;  %s618_s6 = inlined_call_operand.vmem [shape: f32[1,128], index: 6, kind: input, shape index: {}]   ;;  %s619_s7 = inlined_call_operand.vmem [shape: f32[8,128], index: 7, kind: output, shape index: {}]  }
   0x1   :  { %13 = vsyncpa [#allocation5], 0  ;;  %s501_s24 = smov [#allocation2]   ;;  %s453_s28 = scalar_lea.hbm %s615_s3, 1024 }
   0x2   :  { %s25_s25 = sshll.u32 %s501_s24, 4  ;;  %p454_p0 = scmp.ne.s32.totalorder %s615_s3, %s453_s28  ;;  %s26_s25 = int_to_ptr.vmem [resolvable:$true] %s25_s25 }
   0x3   :  { %p457_p1 = scmp.lt.u32.totalorder %s453_s28, %s615_s3 }
   0x5   :  { %p459_p2 = pnand %p457_p1, %p454_p0 }
   0x7   :  { %462 = shalt.err (!%p459_p2)
}
   0x8   :  { %s463_s10 = scalar_lea.vmem %s26_s25, 1024  ;;  %p468_p4 = scmp.lt.s32.totalorder %s26_s25, %s26_s25 }
   0x9   :  { %p464_p3 = scmp.ne.s32.totalorder %s26_s25, %s463_s10  ;;  %p469_p5 = scmp.lt.s32.totalorder %s463_s10, %s463_s10 }
   0xb   :  { %p470_p6 = por %p469_p5, %p468_p4 }
   0xd   :  { %p471_p7 = pnand %p470_p6, %p464_p3 }
   0xf   :  { %474 = shalt.err (!%p471_p7)
}
  0x10   :  { %s502_s11 = smov 64   ;;  %s503_s12 = smov 4  }
  0x11   :  { %31 = dma.hbm_to_vmem [thread:$0]  %s615_s3, 1024, %s26_s25, [#allocation3], %s502_s11, %s502_s11, %s503_s12  }
  0x12   :  { %s504_s15 = smov [#allocation4]   ;;  %s475_s19 = scalar_lea.hbm %s617_s5, 1024 }
  0x13   :  { %s39_s16 = sshll.u32 %s504_s15, 4  ;;  %p476_p8 = scmp.ne.s32.totalorder %s617_s5, %s475_s19  ;;  %s40_s16 = int_to_ptr.vmem [resolvable:$true] %s39_s16 }
  0x14   :  { %p479_p9 = scmp.lt.u32.totalorder %s475_s19, %s617_s5 }
  0x16   :  { %p481_p10 = pnand %p479_p9, %p476_p8 }
  0x18   :  { %484 = shalt.err (!%p481_p10)
}
  0x19   :  { %s485_s24 = scalar_lea.vmem %s40_s16, 1024  ;;  %p490_p12 = scmp.lt.s32.totalorder %s40_s16, %s40_s16 }
  0x1a   :  { %p486_p11 = scmp.ne.s32.totalorder %s40_s16, %s485_s24  ;;  %p491_p13 = scmp.lt.s32.totalorder %s485_s24, %s485_s24 }
  0x1c   :  { %p492_p0 = por %p491_p13, %p490_p12 }
  0x1e   :  { %p493_p1 = pnand %p492_p0, %p486_p11 }
  0x20   :  { %496 = shalt.err (!%p493_p1)
}
  0x21   :  { %45 = dma.hbm_to_vmem [thread:$0]  %s617_s5, 1024, %s40_s16, [#allocation5], %s502_s11, %s502_s11, %s503_s12  }
  0x22   :  { %497 = dma.done.wait [#allocation3], 1024  }
  0x23   :  { %498 = vsyncadd [#allocation3], 4294966272 }
  0x24   :  { %499 = dma.done.wait [#allocation5], 1024  }
  0x25   :  { %500 = vsyncadd [#allocation5], 4294966272  ;;  %v505_v0 = vmov 0.0   ;;  %vm506_vm0 = vmmov 0   ;;  %vm68_vm1 = vcmask 1043456   ;;  %vm64_vm2 = vcmask 64512  }
  0x26   :  { %385 = vmatprep.subr.bf16.mxu0 %v505_v0  ;;  %387 = vmatprep.mubr.msk.bf16.mxu0 %vm506_vm0, %v505_v0  ;;  %v56_v1 = vld [vmem:[%s613_s1] sm:$0xf]  ;;  %v438_v5 = vld [vmem:[#allocation2 + $0x8] sm:$0xff]   ;;  %v439_v6 = vld [vmem:[#allocation2 + $0x10] sm:$0xff]  }
  0x27   :  { %391 = vmatprep.subr.bf16.mxu1 %v505_v0  ;;  %407 = vmatprep.mubr.msk.bf16.mxu1 %vm506_vm0, %v505_v0  ;;  %v70_v2 = vsel %vm68_vm1, %v56_v1, 0  ;;  %v437_v3 = vld [vmem:[#allocation2] sm:$0xff]   ;;  %v440_v7 = vld [vmem:[#allocation2 + $0x18] sm:$0xff]   ;;  %v442_v9 = vld [vmem:[#allocation2 + $0x28] sm:$0xff]  }
  0x28   :  { %386 = vmatpush3.bf16.msra.mxu0 %v70_v2  ;;  %v55_v4 = vld [vmem:[%s612_s0] sm:$0xf]  ;;  %392 = vmatpush3.bf16.msra.mxu1 %v437_v3  ;;  %v443_v10 = vld [vmem:[#allocation2 + $0x30] sm:$0xff]   ;;  %v444_v11 = vld [vmem:[#allocation2 + $0x38] sm:$0xff]  }
  0x29   :  { %411 = vmatprep.subr.bf16.mxu0 %v505_v0  ;;  %393 = vmatprep.subr.bf16.mxu1 %v505_v0  ;;  %v441_v8 = vld [vmem:[#allocation2 + $0x20] sm:$0xff]   ;;  %v446_v13 = vld [vmem:[#allocation4 + $0x8] sm:$0xff]   ;;  %v447_v14 = vld [vmem:[#allocation4 + $0x10] sm:$0xff]  }
  0x2a   :  { %v445_v12 = vld [vmem:[#allocation4] sm:$0xff]   ;;  %v448_v15 = vld [vmem:[#allocation4 + $0x18] sm:$0xff]   ;;  %v450_v17 = vld [vmem:[#allocation4 + $0x28] sm:$0xff]  }
  0x2b   :  { %388 = vmatmul.mubr.msk.bf16.vlgmr.msra.gmra.mrb[0].mxu0 %vm64_vm2, %v55_v4  ;;  %v449_v16 = vld [vmem:[#allocation4 + $0x20] sm:$0xff]   ;;  %v451_v26 = vld [vmem:[#allocation4 + $0x30] sm:$0xff]   ;;  %v452_v27 = vld [vmem:[#allocation4 + $0x38] sm:$0xff]  }
  0x2c   :  { %427 = vmatprep.mubr.msk.bf16.mxu0 %vm506_vm0, %v505_v0  ;;  %394 = vmatpush3.bf16.msra.mxu1 %v438_v5  ;;  %v345_v18 = vld [vmem:[%s614_s2] ss:$0 sm:$0xff] }
  0x2d   :  { %395 = vmatprep.subr.bf16.mxu1 %v505_v0  ;;  %412 = vmatpush3.bf16.msra.mxu0 %v445_v12  ;;  %v347_v28 = vld [vmem:[%s616_s4] ss:$0 sm:$0xff] }
  0x2e   :  { %413 = vmatprep.subr.bf16.mxu0 %v505_v0  ;;  %v356_v36 = vld [vmem:[%s618_s6] ss:$0 sm:$0xff] }
  0x30   :  { %396 = vmatpush3.bf16.msra.mxu1 %v439_v6 }
  0x31   :  { %397 = vmatprep.subr.bf16.mxu1 %v505_v0  ;;  %414 = vmatpush3.bf16.msra.mxu0 %v446_v13 }
  0x32   :  { %415 = vmatprep.subr.bf16.mxu0 %v505_v0 }
  0x34   :  { %398 = vmatpush3.bf16.msra.mxu1 %v440_v7 }
  0x35   :  { %399 = vmatprep.subr.bf16.mxu1 %v505_v0  ;;  %416 = vmatpush3.bf16.msra.mxu0 %v447_v14 }
  0x36   :  { %417 = vmatprep.subr.bf16.mxu0 %v505_v0 }
  0x38   :  { %400 = vmatpush3.bf16.msra.mxu1 %v441_v8 }
  0x39   :  { %401 = vmatprep.subr.bf16.mxu1 %v505_v0  ;;  %418 = vmatpush3.bf16.msra.mxu0 %v448_v15 }
  0x3a   :  { %419 = vmatprep.subr.bf16.mxu0 %v505_v0 }
  0x3c   :  { %402 = vmatpush3.bf16.msra.mxu1 %v442_v9 }
  0x3d   :  { %403 = vmatprep.subr.bf16.mxu1 %v505_v0  ;;  %420 = vmatpush3.bf16.msra.mxu0 %v449_v16 }
  0x3e   :  { %421 = vmatprep.subr.bf16.mxu0 %v505_v0 }
  0x40   :  { %404 = vmatpush3.bf16.msra.mxu1 %v443_v10 }
  0x41   :  { %405 = vmatprep.subr.bf16.mxu1 %v505_v0  ;;  %422 = vmatpush3.bf16.msra.mxu0 %v450_v17 }
  0x42   :  { %423 = vmatprep.subr.bf16.mxu0 %v505_v0 }
  0x44   :  { %406 = vmatpush3.bf16.msra.mxu1 %v444_v11 }
  0x45   :  { %424 = vmatpush3.bf16.msra.mxu0 %v451_v26 }
  0x46   :  { %425 = vmatprep.subr.bf16.mxu0 %v505_v0 }
  0x49   :  { %426 = vmatpush3.bf16.msra.mxu0 %v452_v27 }
  0xfe   :  { %v106_v19 = vpop.f32.mrb[0].mxu0 }
  0xff   :  { %v107_v20 = vadd.f32 %v345_v18, %v106_v19  ;;  %v389_v21 = vpop.f32.mrb[1].mxu0 }
 0x100   :  { %v109_v22 = vpop.f32.mrb[2].mxu0 }
 0x101   :  { %v112_v23 = vmax.f32 %v107_v20, 0.0  ;;  %v390_v24 = vpop.f32.mrb[3].mxu0 }
 0x103   :  { %v113_v25 = vpack.c.bf16 %v112_v23, %v112_v23 }
 0x105   :  { %408 = vmatmul.mubr.bf16.vlgmr.msra.gmra.mrb[0].mxu1 %v113_v25 }
 0x1d8   :  { %v219_v29 = vpop.f32.mrb[0].mxu1 }
 0x1d9   :  { %v220_v30 = vadd.f32 %v347_v28, %v219_v29  ;;  %v409_v31 = vpop.f32.mrb[1].mxu1 }
 0x1da   :  { %v222_v32 = vpop.f32.mrb[2].mxu1 }
 0x1db   :  { %v225_v33 = vmax.f32 %v220_v30, 0.0  ;;  %v410_v34 = vpop.f32.mrb[3].mxu1 }
 0x1dd   :  { %v226_v35 = vpack.c.bf16 %v225_v33, %v225_v33 }
 0x1df   :  { %428 = vmatmul.mubr.bf16.vlgmr.msra.gmra.mrb[4].mxu0 %v226_v35 }
 0x2b2   :  { %v332_v37 = vpop.f32.mrb[4].mxu0 }
 0x2b3   :  { %v333_v38 = vadd.f32 %v356_v36, %v332_v37  ;;  %v429_v39 = vpop.f32.mrb[5].mxu0 }
 0x2b4   :  { %v335_v40 = vpop.f32.mrb[6].mxu0 }
 0x2b5   :  { %338 = vst [vmem:[%s619_s7] sm:$0xff] %v333_v38  ;;  %v430_v41 = vpop.f32.mrb[7].mxu0 }
 0x2b6   :  { %343 = vsyncpa [#allocation3], 1 }
 0x2b7   :  { %344 = vsyncpa [#allocation5], 1 }

</bundles_post_ra>
